<compile_context>
chip_gen: v7x
topology: tpu7x:2x2x1
jax: 0.10.0
libtpu: 0.0.40
codegen_flags: <defaults>
</compile_context>

<pallas_src>
import jax
import jax.numpy as jnp
from jax.experimental import pallas as pl
from jax.experimental.pallas import tpu as pltpu


def _normalize_kernel_row_affine(img_ref, sb_ref, out_ref):
    # img_ref/out_ref: (R_TILE, L_TILE); sb_ref: (R_TILE, 2) packed [scale, bias].
    x = img_ref[...].astype(jnp.float32)
    scale = sb_ref[:, 0:1]  # (R_TILE, 1) -> lane broadcast
    bias = sb_ref[:, 1:2]
    out_ref[...] = (x * scale + bias).astype(out_ref.dtype)


def _normalize_kernel_lane_affine(img_ref, sb_ref, out_ref):
    # img_ref/out_ref: (R_TILE, L_TILE); sb_ref: (2, L_TILE) packed [scale; bias].
    x = img_ref[...].astype(jnp.float32)
    scale = sb_ref[0:1, :]  # (1, L_TILE) -> sublane broadcast
    bias = sb_ref[1:2, :]
    out_ref[...] = (x * scale + bias).astype(out_ref.dtype)


def _vmem_capacity_bytes():
    try:
        return int(pltpu.get_tpu_info().vmem_capacity_bytes)
    except Exception:
        return 64 << 20  # conservative (v7x-sized) fallback


def _sublane_multiple(itemsize):
    # Sub-32-bit dtypes pack along sublanes: 8 (f32), 16 (bf16), 32 (int8/fp8).
    return 8 * max(1, 4 // max(1, itemsize))


def _round_down(v, m):
    return (v // m) * m


def _tile_policy(rows, lanes, itemsize):
    """Return (r_tile, l_tile, vmem_limit_bytes) for a 2-D streaming grid."""
    vmem_cap = _vmem_capacity_bytes()
    if vmem_cap <= (64 << 20):
        # v7x-class: ~3.2 TB/s HBM, but only 64 MiB VMEM -> bigger tiles,
        # explicit conservative VMEM limit.
        target = 5 << 20
        vmem_limit = 48 << 20
    else:
        # v5e / v6e: 128 MiB physical VMEM; 4 MiB tiles, limit raised above the
        # v5e 16 MiB default scoped limit but with large headroom.
        target = 4 << 20
        vmem_limit = 32 << 20

    sub = _sublane_multiple(itemsize)
    min_rows = min(rows, sub)

    # Lane tiling (only legal when lanes % 128 == 0); needed when even a
    # minimum-height full-width slab would exceed the per-tile budget.
    if lanes % 128 == 0 and min_rows * lanes * itemsize > target:
        l_tile = _round_down(target // (min_rows * itemsize), 128)
        l_tile = max(128, min(l_tile, lanes))
    else:
        l_tile = lanes

    # Row tiling to fill the per-tile byte budget.
    r_tile = max(1, target // (l_tile * itemsize))
    if r_tile >= rows:
        r_tile = rows
    else:
        r_tile = min(rows, max(sub, _round_down(r_tile, sub)))

    # Guarantee >= 2 row-grid steps for non-trivial inputs so both v7x
    # TensorCores get work ("parallel" axis sharding).
    total_bytes = rows * lanes * itemsize
    if r_tile == rows and rows >= 2 * sub and total_bytes >= (1 << 20):
        r_tile = max(sub, _round_down(rows // 2, sub))

    return r_tile, l_tile, vmem_limit


def normalization(img, mean, std):
    """Pallas equivalent of Normalization.forward: (img - mean)/std per channel."""
    N, C, H, W = img.shape
    mean = jnp.asarray(mean, dtype=jnp.float32).reshape(C)
    std = jnp.asarray(std, dtype=jnp.float32).reshape(C)

    inv_std = 1.0 / std
    neg_mean_scaled = -mean * inv_std

    plane = H * W
    # Prefer lane-dense (N*C, H*W); if H*W is not 128-aligned but C*H*W is,
    # fold channels into the lane axis so stores stay unmasked full-width.
    row_affine = (plane % 128 == 0) or ((C * plane) % 128 != 0)

    if row_affine:
        rows, lanes = N * C, plane
        x2d = img.reshape(rows, lanes)
        # Packed per-row [scale, bias]: one small side DMA per grid step.
        sb = jnp.stack([jnp.tile(inv_std, N), jnp.tile(neg_mean_scaled, N)], axis=1)
        kernel = _normalize_kernel_row_affine
    else:
        rows, lanes = N, C * plane
        x2d = img.reshape(rows, lanes)
        # Packed per-lane [scale; bias], constant across the row-grid axis.
        sb = jnp.stack(
            [jnp.repeat(inv_std, plane), jnp.repeat(neg_mean_scaled, plane)], axis=0
        )
        kernel = _normalize_kernel_lane_affine

    itemsize = img.dtype.itemsize
    r_tile, l_tile, vmem_limit = _tile_policy(rows, lanes, itemsize)
    grid = (pl.cdiv(rows, r_tile), pl.cdiv(lanes, l_tile))

    if row_affine:
        sb_spec = pl.BlockSpec((r_tile, 2), lambda i, j: (i, 0))
    else:
        sb_spec = pl.BlockSpec((2, l_tile), lambda i, j: (0, j))

    out2d = pl.pallas_call(
        kernel,
        out_shape=jax.ShapeDtypeStruct((rows, lanes), img.dtype),
        grid=grid,
        in_specs=[
            pl.BlockSpec((r_tile, l_tile), lambda i, j: (i, j)),  # image tile
            sb_spec,                                              # packed scale/bias
        ],
        out_specs=pl.BlockSpec((r_tile, l_tile), lambda i, j: (i, j)),
        compiler_params=pltpu.CompilerParams(
            dimension_semantics=("parallel", "parallel"),
            vmem_limit_bytes=vmem_limit,
        ),
    )(x2d, sb)

    return out2d.reshape(N, C, H, W)


if __name__ == "__main__":
    key = jax.random.PRNGKey(0)

    # Small shapes consistent with the module: batch=2, channels=4, spatial=16.
    N, C, H, W = 2, 4, 16, 16
    img = jax.random.uniform(key, (N, C, H, W), dtype=jnp.float32)

    # Deterministic per-channel normalization constants (module __init__ args).
    mean = jnp.array([0.485, 0.456, 0.406, 0.500], dtype=jnp.float32)
    std = jnp.array([0.229, 0.224, 0.225, 0.250], dtype=jnp.float32)

    out = normalization(img, mean, std)
    out = jax.block_until_ready(out)

    # Reference check (plain JAX, same semantics as the PyTorch forward).
    ref = (img - mean[None, :, None, None]) / std[None, :, None, None]
    assert out.shape == img.shape and out.dtype == img.dtype
    # Kernel computes x*(1/std) + (-mean/std) (FMA), not subtract-then-divide,
    # so results are close but not bit-identical.
    assert jnp.allclose(out, ref, atol=1e-5, rtol=1e-5)

    print("KERNEL_OK")
</pallas_src>

<mosaic_0001>
module attributes {stable_mosaic.version = 11 : i64} {
  func.func @_normalize_kernel_row_affine(%arg0: i32, %arg1: i32, %arg2: memref<8x256xf32, #tpu.memory_space<vmem>>, %arg3: memref<8x2xf32, #tpu.memory_space<vmem>>, %arg4: memref<8x256xf32, #tpu.memory_space<vmem>>) attributes {dimension_semantics = [#tpu.dimension_semantics<parallel>, #tpu.dimension_semantics<parallel>], iteration_bounds = array<i64: 1, 1>, scalar_prefetch = 0 : i64, scratch_operands = 0 : i64, tpu.core_type = #tpu.core_type<tc>, window_params = [{transform_indices = @transform_0, window_bounds = array<i64: 8, 256>}, {transform_indices = @transform_1, window_bounds = array<i64: 8, 2>}, {transform_indices = @transform_2, window_bounds = array<i64: 8, 256>}]} {
    %c0 = arith.constant 0 : index
    %c0_0 = arith.constant 0 : index
    %0 = vector.load %arg2[%c0, %c0_0] : memref<8x256xf32, #tpu.memory_space<vmem>>, vector<8x256xf32>
    %c0_1 = arith.constant 0 : index
    %c0_2 = arith.constant 0 : index
    %1 = vector.load %arg3[%c0_1, %c0_2] : memref<8x2xf32, #tpu.memory_space<vmem>>, vector<8x1xf32>
    %c0_3 = arith.constant 0 : index
    %c1 = arith.constant 1 : index
    %2 = vector.load %arg3[%c0_3, %c1] : memref<8x2xf32, #tpu.memory_space<vmem>>, vector<8x1xf32>
    %3 = vector.broadcast %1 : vector<8x1xf32> to vector<8x256xf32>
    %4 = arith.mulf %0, %3 : vector<8x256xf32>
    %5 = vector.broadcast %2 : vector<8x1xf32> to vector<8x256xf32>
    %6 = arith.addf %4, %5 : vector<8x256xf32>
    %c0_4 = arith.constant 0 : index
    %c0_5 = arith.constant 0 : index
    %7 = vector.load %arg4[%c0_4, %c0_5] : memref<8x256xf32, #tpu.memory_space<vmem>>, vector<8x256xf32>
    tpu.vector_store %arg4[%c0_4, %c0_5], %6 {strides = array<i32>} : memref<8x256xf32, #tpu.memory_space<vmem>>, vector<8x256xf32>,
    return
  }
  func.func @transform_0(%arg0: i32, %arg1: i32) -> (i32, i32) {
    %c0_i32 = arith.constant 0 : i32
    return %arg0, %arg1 : i32, i32
  }
  func.func @transform_1(%arg0: i32, %arg1: i32) -> (i32, i32) {
    %c0_i32 = arith.constant 0 : i32
    %c0_i32_0 = arith.constant 0 : i32
    return %arg0, %c0_i32 : i32, i32
  }
  func.func @transform_2(%arg0: i32, %arg1: i32) -> (i32, i32) {
    %c0_i32 = arith.constant 0 : i32
    return %arg0, %arg1 : i32, i32
  }
}

</mosaic_0001>

<bundles_post_ra>
// kernel: tpu_custom_call.1
= control target key start
LH: loop header
LB: loop body
LE: loop exit
PB: predicated region body
PF: predicated region fallthrough
CT: control target
= control target key end

     0   :  { %7 = vsyncpa [#allocation3], 0  ;;  %s157_s0 = inlined_call_operand.hbm [shape: f32[8,256], index: 0, kind: input, shape index: {}]   ;;  %s158_s1 = inlined_call_operand.vmem [shape: f32[8,2], index: 1, kind: input, shape index: {}]   ;;  %s159_s2 = inlined_call_operand.hbm [shape: f32[8,256], index: 2, kind: output, shape index: {}]  }
   0x1   :  { %8 = vsyncpa [#allocation4], 0  ;;  %s111_s9 = smov [#allocation2]   ;;  %s63_s13 = scalar_lea.hbm %s157_s0, 256 }
   0x2   :  { %s15_s10 = sshll.u32 %s111_s9, 4  ;;  %p64_p0 = scmp.ne.s32.totalorder %s157_s0, %s63_s13  ;;  %s16_s10 = int_to_ptr.vmem [resolvable:$true] %s15_s10 }
   0x3   :  { %p67_p1 = scmp.lt.u32.totalorder %s63_s13, %s157_s0 }
   0x5   :  { %p69_p2 = pnand %p67_p1, %p64_p0 }
   0x7   :  { %72 = shalt.err (!%p69_p2)
}
   0x8   :  { %s73_s18 = scalar_lea.vmem %s16_s10, 256  ;;  %p78_p4 = scmp.lt.s32.totalorder %s16_s10, %s16_s10 }
   0x9   :  { %p74_p3 = scmp.ne.s32.totalorder %s16_s10, %s73_s18  ;;  %p79_p5 = scmp.lt.s32.totalorder %s73_s18, %s73_s18 }
   0xb   :  { %p80_p6 = por %p79_p5, %p78_p4 }
   0xd   :  { %p81_p7 = pnand %p80_p6, %p74_p3 }
   0xf   :  { %84 = shalt.err (!%p81_p7)
}
  0x10   :  { %18 = dma.hbm_to_vmem [thread:$0]  %s157_s0, 256, %s16_s10, [#allocation3]  }
  0x11   :  { %107 = dma.done.wait [#allocation3], 256  }
  0x12   :  { %108 = vsyncadd [#allocation3], 4294967040  ;;  %v112_v0 = vmov 0   ;;  %v26_v1 = vld [vmem:[%s158_s1] sm:$0xff]  ;;  %v113_v2 = vmov 1   ;;  %v25_v5 = vld [vmem:[#allocation2 + $0x8] sm:$0xff] }
  0x13   :  { %61 = vset.pattern.permute.xlu0 %v112_v0  ;;  %v24_v4 = vld [vmem:[#allocation2] sm:$0xff]  ;;  %s114_s23 = smov [#allocation5]  }
  0x14   :  { %29 = vperm.xlu0 %61, %v26_v1   ;;  %s48_s24 = sshll.u32 %s114_s23, 4  ;;  %s49_s24 = int_to_ptr.vmem [resolvable:$true] %s48_s24 }
  0x15   :  { %s85_s0 = scalar_lea.vmem %s49_s24, 256  ;;  %p90_p9 = scmp.lt.s32.totalorder %s49_s24, %s49_s24 }
  0x16   :  { %p86_p8 = scmp.ne.s32.totalorder %s49_s24, %s85_s0  ;;  %p91_p10 = scmp.lt.s32.totalorder %s85_s0, %s85_s0 }
  0x18   :  { %62 = vset.pattern.permute.xlu0 %v113_v2  ;;  %p92_p11 = por %p91_p10, %p90_p9 }
  0x19   :  { %35 = vperm.xlu0 %62, %v26_v1  }
  0x1a   :  { %p93_p12 = pnand %p92_p11, %p86_p8 }
  0x93   :  { %v30_v3 = vpop.permute.xlu0 %29 }
  0x94   :  { %v32_v6 = vmul.f32 %v30_v3, %v24_v4  ;;  %v33_v7 = vmul.f32 %v30_v3, %v25_v5 }
  0x98   :  { %v36_v8 = vpop.permute.xlu0 %35 }
  0x99   :  { %v38_v9 = vadd.f32 %v36_v8, %v32_v6  ;;  %v39_v10 = vadd.f32 %v36_v8, %v33_v7 }
  0x9b   :  { %40 = vst [vmem:[#allocation5] sm:$0xff] %v38_v9  ;;  %41 = vst [vmem:[#allocation5 + $0x8] sm:$0xff] %v39_v10 }
  0x9c   :  { %96 = shalt.err (!%p93_p12)
}
  0x9d   :  { %s97_s26 = scalar_lea.hbm %s159_s2, 256 }
  0x9e   :  { %p98_p13 = scmp.ne.s32.totalorder %s159_s2, %s97_s26  ;;  %p101_p0 = scmp.lt.u32.totalorder %s97_s26, %s159_s2 }
  0xa0   :  { %p103_p1 = pnand %p101_p0, %p98_p13 }
  0xa2   :  { %106 = shalt.err (!%p103_p1)
}
  0xa3   :  { %51 = dma.vmem_to_hbm [thread:$0]  %s49_s24, 256, %s159_s2, [#allocation4]  }
  0xa4   :  { %109 = dma.done.wait [#allocation4], 256  }
  0xa5   :  { %110 = vsyncadd [#allocation4], 4294967040 }
  0xa6   :  { %55 = vsyncpa [#allocation3], 1 }
  0xa7   :  { %56 = vsyncpa [#allocation4], 1 }

</bundles_post_ra>
